<compile_context>
chip_gen: v5e
topology: v5e:2x2
jax: 0.10.0
libtpu: 0.0.40
codegen_flags: <defaults>
</compile_context>

<pallas_src>
import functools

import jax
import jax.numpy as jnp
from jax.experimental import pallas as pl
from jax.experimental.pallas import tpu as pltpu


def mlp_kernel(x_ref, w1_ref, b1_ref, w2_ref, b2_ref,
               w3_ref, b3_ref, w4_ref, b4_ref, o_ref):
    # Batch-major tiles: (tb, features).  Weights are (in, out) bf16, biases
    # are (1, out) f32.  MXU runs on bf16 operands and accumulates in f32; all
    # element-wise work (bias add, ReLU) stays in f32.
    x = x_ref[...].astype(jnp.bfloat16)                                  # (tb, 9)
    h = jnp.dot(x, w1_ref[...], preferred_element_type=jnp.float32)      # (tb, 128)
    h = jnp.maximum(h + b1_ref[...], 0.0)
    h = jnp.dot(h.astype(jnp.bfloat16), w2_ref[...],
                preferred_element_type=jnp.float32)                      # (tb, 64)
    h = jnp.maximum(h + b2_ref[...], 0.0)
    h = jnp.dot(h.astype(jnp.bfloat16), w3_ref[...],
                preferred_element_type=jnp.float32)                      # (tb, 32)
    h = jnp.maximum(h + b3_ref[...], 0.0)
    h = jnp.dot(h.astype(jnp.bfloat16), w4_ref[...],
                preferred_element_type=jnp.float32) + b4_ref[...]        # (tb, 9)
    o_ref[...] = h.astype(o_ref.dtype)


def _round_up(n: int, m: int) -> int:
    return ((n + m - 1) // m) * m


def _pick_batch_tile(batch: int, tb_max: int = 2048) -> int:
    """Multiple-of-8 batch tile: <= tb_max, <128 rows of padding waste per
    grid step, and >= 2 grid steps once round_up(B,128) >= 256 so both v7x
    TensorCores get work (no-op on single-TC v5e/v6e)."""
    b128 = _round_up(max(batch, 1), 128)
    steps = max(-(-b128 // tb_max), 2 if b128 >= 256 else 1)
    tb = _round_up(-(-b128 // steps), 128)
    return min(tb, _round_up(batch, 8))


@functools.partial(jax.jit, static_argnames=("tb_max",))
def model_game_forward(x, params, *, tb_max=2048):
    """x: (B, 9) float32 -> (B, 9) float32."""
    (w1, b1), (w2, b2), (w3, b3), (w4, b4) = params
    B = x.shape[0]
    tb = _pick_batch_tile(B, tb_max)
    grid = (pl.cdiv(B, tb),)

    # One-time weight prep (~50 KB total): MXU-preferred (in, out) orientation
    # in bf16 so no in-kernel relayout is emitted; biases stay f32 row vectors.
    w1t, w2t, w3t, w4t = (w.T.astype(jnp.bfloat16) for w in (w1, w2, w3, w4))
    b1r, b2r, b3r, b4r = (b.reshape(1, -1).astype(jnp.float32)
                          for b in (b1, b2, b3, b4))

    const = lambda a: pl.BlockSpec(a.shape, lambda i: (0, 0))

    return pl.pallas_call(
        mlp_kernel,
        out_shape=jax.ShapeDtypeStruct((B, 9), jnp.float32),
        grid=grid,
        in_specs=[pl.BlockSpec((tb, 9), lambda i: (i, 0)),   # streamed x tile
                  const(w1t), const(b1r), const(w2t), const(b2r),
                  const(w3t), const(b3r), const(w4t), const(b4r)],
        out_specs=pl.BlockSpec((tb, 9), lambda i: (i, 0)),
        compiler_params=pltpu.CompilerParams(
            dimension_semantics=("parallel",),
            vmem_limit_bytes=32 * 1024 * 1024),
    )(x, w1t, b1r, w2t, b2r, w3t, b3r, w4t, b4r)


def init_params(key):
    """nn.Linear-style init: U(-1/sqrt(fan_in), 1/sqrt(fan_in)).
    Weights are PyTorch-native (out_features, in_features); biases (out_features,)."""
    dims = [9, 128, 64, 32, 9]
    params = []
    for i in range(4):
        key, kw, kb = jax.random.split(key, 3)
        fan_in, fan_out = dims[i], dims[i + 1]
        bound = 1.0 / (fan_in ** 0.5)
        w = jax.random.uniform(kw, (fan_out, fan_in), jnp.float32, -bound, bound)
        b = jax.random.uniform(kb, (fan_out,), jnp.float32, -bound, bound)
        params.append((w, b))
    return params


def reference_forward_f32(x, params):
    h = x
    for i, (w, b) in enumerate(params):
        h = h @ w.T + b
        if i < 3:
            h = jnp.maximum(h, 0.0)
    return h


def reference_forward_bf16(x, params):
    """Emulates the kernel's numerics: bf16 matmul operands, f32 accumulate,
    f32 bias/ReLU."""
    h = x
    for i, (w, b) in enumerate(params):
        hb = h.astype(jnp.bfloat16).astype(jnp.float32)
        wb = w.astype(jnp.bfloat16).astype(jnp.float32)
        h = hb @ wb.T + b
        if i < 3:
            h = jnp.maximum(h, 0.0)
    return h


if __name__ == "__main__":
    key = jax.random.PRNGKey(0)
    key, kx = jax.random.split(key)
    params = init_params(key)

    # Small aligned case + ragged multi-tile case (exercises the masked last
    # block and the >=2-step "parallel" grid).
    for B in (8, 300):
        x = jax.random.normal(jax.random.fold_in(kx, B), (B, 9), dtype=jnp.float32)
        out = model_game_forward(x, params)
        jax.block_until_ready(out)
        assert out.shape == (B, 9)

        ref16 = reference_forward_bf16(x, params)
        ref32 = reference_forward_f32(x, params)
        assert jnp.allclose(out, ref16, atol=1e-3, rtol=1e-3), \
            f"B={B}: max|err| vs bf16 ref = {jnp.max(jnp.abs(out - ref16))}"
        assert jnp.allclose(out, ref32, atol=5e-2, rtol=5e-2), \
            f"B={B}: max|err| vs f32 ref = {jnp.max(jnp.abs(out - ref32))}"

    print("KERNEL_OK")
</pallas_src>

<mosaic_0001>
module attributes {stable_mosaic.version = 11 : i64} {
  func.func @mlp_kernel(%arg0: i32, %arg1: memref<8x9xf32, #tpu.memory_space<vmem>>, %arg2: memref<9x128xbf16, #tpu.memory_space<vmem>>, %arg3: memref<1x128xf32, #tpu.memory_space<vmem>>, %arg4: memref<128x64xbf16, #tpu.memory_space<vmem>>, %arg5: memref<1x64xf32, #tpu.memory_space<vmem>>, %arg6: memref<64x32xbf16, #tpu.memory_space<vmem>>, %arg7: memref<1x32xf32, #tpu.memory_space<vmem>>, %arg8: memref<32x9xbf16, #tpu.memory_space<vmem>>, %arg9: memref<1x9xf32, #tpu.memory_space<vmem>>, %arg10: memref<8x9xf32, #tpu.memory_space<vmem>>) attributes {dimension_semantics = [#tpu.dimension_semantics<parallel>], iteration_bounds = array<i64: 1>, scalar_prefetch = 0 : i64, scratch_operands = 0 : i64, tpu.core_type = #tpu.core_type<tc>, window_params = [{transform_indices = @transform_0, window_bounds = array<i64: 8, 9>}, {pipeline_mode = #tpu.pipeline_mode<synchronous>, transform_indices = @transform_1, window_bounds = array<i64: 9, 128>}, {pipeline_mode = #tpu.pipeline_mode<synchronous>, transform_indices = @transform_2, window_bounds = array<i64: 1, 128>}, {pipeline_mode = #tpu.pipeline_mode<synchronous>, transform_indices = @transform_3, window_bounds = array<i64: 128, 64>}, {pipeline_mode = #tpu.pipeline_mode<synchronous>, transform_indices = @transform_4, window_bounds = array<i64: 1, 64>}, {pipeline_mode = #tpu.pipeline_mode<synchronous>, transform_indices = @transform_5, window_bounds = array<i64: 64, 32>}, {pipeline_mode = #tpu.pipeline_mode<synchronous>, transform_indices = @transform_6, window_bounds = array<i64: 1, 32>}, {pipeline_mode = #tpu.pipeline_mode<synchronous>, transform_indices = @transform_7, window_bounds = array<i64: 32, 9>}, {pipeline_mode = #tpu.pipeline_mode<synchronous>, transform_indices = @transform_8, window_bounds = array<i64: 1, 9>}, {transform_indices = @transform_9, window_bounds = array<i64: 8, 9>}]} {
    %c0 = arith.constant 0 : index
    %c0_0 = arith.constant 0 : index
    %0 = vector.load %arg1[%c0, %c0_0] : memref<8x9xf32, #tpu.memory_space<vmem>>, vector<8x9xf32>
    %1 = arith.truncf %0 : vector<8x9xf32> to vector<8x9xbf16>
    %c0_1 = arith.constant 0 : index
    %c0_2 = arith.constant 0 : index
    %2 = vector.load %arg2[%c0_1, %c0_2] : memref<9x128xbf16, #tpu.memory_space<vmem>>, vector<9x128xbf16>
    %cst = arith.constant dense<0.000000e+00> : vector<8x128xf32>
    %3 = tpu.matmul %1, %2, %cst {dimension_numbers = #tpu.dot_dimension_numbers<[1], [0], [0], [1], [0, 0, 1, 1], [], []>} : vector<8x9xbf16>, vector<9x128xbf16>, vector<8x128xf32> -> vector<8x128xf32>
    %c0_3 = arith.constant 0 : index
    %c0_4 = arith.constant 0 : index
    %4 = vector.load %arg3[%c0_3, %c0_4] : memref<1x128xf32, #tpu.memory_space<vmem>>, vector<1x128xf32>
    %5 = vector.broadcast %4 : vector<1x128xf32> to vector<8x128xf32>
    %6 = arith.addf %3, %5 : vector<8x128xf32>
    %cst_5 = arith.constant 0.000000e+00 : f32
    %7 = vector.broadcast %cst_5 : f32 to vector<8x128xf32>
    %8 = arith.maximumf %6, %7 : vector<8x128xf32>
    %9 = arith.truncf %8 : vector<8x128xf32> to vector<8x128xbf16>
    %c0_6 = arith.constant 0 : index
    %c0_7 = arith.constant 0 : index
    %10 = vector.load %arg4[%c0_6, %c0_7] : memref<128x64xbf16, #tpu.memory_space<vmem>>, vector<128x64xbf16>
    %cst_8 = arith.constant dense<0.000000e+00> : vector<8x64xf32>
    %11 = tpu.matmul %9, %10, %cst_8 {dimension_numbers = #tpu.dot_dimension_numbers<[1], [0], [0], [1], [0, 0, 1, 1], [], []>} : vector<8x128xbf16>, vector<128x64xbf16>, vector<8x64xf32> -> vector<8x64xf32>
    %c0_9 = arith.constant 0 : index
    %c0_10 = arith.constant 0 : index
    %12 = vector.load %arg5[%c0_9, %c0_10] : memref<1x64xf32, #tpu.memory_space<vmem>>, vector<1x64xf32>
    %13 = vector.broadcast %12 : vector<1x64xf32> to vector<8x64xf32>
    %14 = arith.addf %11, %13 : vector<8x64xf32>
    %cst_11 = arith.constant 0.000000e+00 : f32
    %15 = vector.broadcast %cst_11 : f32 to vector<8x64xf32>
    %16 = arith.maximumf %14, %15 : vector<8x64xf32>
    %17 = arith.truncf %16 : vector<8x64xf32> to vector<8x64xbf16>
    %c0_12 = arith.constant 0 : index
    %c0_13 = arith.constant 0 : index
    %18 = vector.load %arg6[%c0_12, %c0_13] : memref<64x32xbf16, #tpu.memory_space<vmem>>, vector<64x32xbf16>
    %cst_14 = arith.constant dense<0.000000e+00> : vector<8x32xf32>
    %19 = tpu.matmul %17, %18, %cst_14 {dimension_numbers = #tpu.dot_dimension_numbers<[1], [0], [0], [1], [0, 0, 1, 1], [], []>} : vector<8x64xbf16>, vector<64x32xbf16>, vector<8x32xf32> -> vector<8x32xf32>
    %c0_15 = arith.constant 0 : index
    %c0_16 = arith.constant 0 : index
    %20 = vector.load %arg7[%c0_15, %c0_16] : memref<1x32xf32, #tpu.memory_space<vmem>>, vector<1x32xf32>
    %21 = vector.broadcast %20 : vector<1x32xf32> to vector<8x32xf32>
    %22 = arith.addf %19, %21 : vector<8x32xf32>
    %cst_17 = arith.constant 0.000000e+00 : f32
    %23 = vector.broadcast %cst_17 : f32 to vector<8x32xf32>
    %24 = arith.maximumf %22, %23 : vector<8x32xf32>
    %25 = arith.truncf %24 : vector<8x32xf32> to vector<8x32xbf16>
    %c0_18 = arith.constant 0 : index
    %c0_19 = arith.constant 0 : index
    %26 = vector.load %arg8[%c0_18, %c0_19] : memref<32x9xbf16, #tpu.memory_space<vmem>>, vector<32x9xbf16>
    %cst_20 = arith.constant dense<0.000000e+00> : vector<8x9xf32>
    %27 = tpu.matmul %25, %26, %cst_20 {dimension_numbers = #tpu.dot_dimension_numbers<[1], [0], [0], [1], [0, 0, 1, 1], [], []>} : vector<8x32xbf16>, vector<32x9xbf16>, vector<8x9xf32> -> vector<8x9xf32>
    %c0_21 = arith.constant 0 : index
    %c0_22 = arith.constant 0 : index
    %28 = vector.load %arg9[%c0_21, %c0_22] : memref<1x9xf32, #tpu.memory_space<vmem>>, vector<1x9xf32>
    %29 = vector.broadcast %28 : vector<1x9xf32> to vector<8x9xf32>
    %30 = arith.addf %27, %29 : vector<8x9xf32>
    %c0_23 = arith.constant 0 : index
    %c0_24 = arith.constant 0 : index
    %31 = vector.load %arg10[%c0_23, %c0_24] : memref<8x9xf32, #tpu.memory_space<vmem>>, vector<8x9xf32>
    tpu.vector_store %arg10[%c0_23, %c0_24], %30 {strides = array<i32>} : memref<8x9xf32, #tpu.memory_space<vmem>>, vector<8x9xf32>,
    return
  }
  func.func @transform_0(%arg0: i32) -> (i32, i32) {
    %c0_i32 = arith.constant 0 : i32
    %c0_i32_0 = arith.constant 0 : i32
    return %arg0, %c0_i32 : i32, i32
  }
  func.func @transform_1(%arg0: i32) -> (i32, i32) {
    %c0_i32 = arith.constant 0 : i32
    %c0_i32_0 = arith.constant 0 : i32
    %c0_i32_1 = arith.constant 0 : i32
    return %c0_i32, %c0_i32_0 : i32, i32
  }
  func.func @transform_2(%arg0: i32) -> (i32, i32) {
    %c0_i32 = arith.constant 0 : i32
    %c0_i32_0 = arith.constant 0 : i32
    %c0_i32_1 = arith.constant 0 : i32
    return %c0_i32, %c0_i32_0 : i32, i32
  }
  func.func @transform_3(%arg0: i32) -> (i32, i32) {
    %c0_i32 = arith.constant 0 : i32
    %c0_i32_0 = arith.constant 0 : i32
    %c0_i32_1 = arith.constant 0 : i32
    return %c0_i32, %c0_i32_0 : i32, i32
  }
  func.func @transform_4(%arg0: i32) -> (i32, i32) {
    %c0_i32 = arith.constant 0 : i32
    %c0_i32_0 = arith.constant 0 : i32
    %c0_i32_1 = arith.constant 0 : i32
    return %c0_i32, %c0_i32_0 : i32, i32
  }
  func.func @transform_5(%arg0: i32) -> (i32, i32) {
    %c0_i32 = arith.constant 0 : i32
    %c0_i32_0 = arith.constant 0 : i32
    %c0_i32_1 = arith.constant 0 : i32
    return %c0_i32, %c0_i32_0 : i32, i32
  }
  func.func @transform_6(%arg0: i32) -> (i32, i32) {
    %c0_i32 = arith.constant 0 : i32
    %c0_i32_0 = arith.constant 0 : i32
    %c0_i32_1 = arith.constant 0 : i32
    return %c0_i32, %c0_i32_0 : i32, i32
  }
  func.func @transform_7(%arg0: i32) -> (i32, i32) {
    %c0_i32 = arith.constant 0 : i32
    %c0_i32_0 = arith.constant 0 : i32
    %c0_i32_1 = arith.constant 0 : i32
    return %c0_i32, %c0_i32_0 : i32, i32
  }
  func.func @transform_8(%arg0: i32) -> (i32, i32) {
    %c0_i32 = arith.constant 0 : i32
    %c0_i32_0 = arith.constant 0 : i32
    %c0_i32_1 = arith.constant 0 : i32
    return %c0_i32, %c0_i32_0 : i32, i32
  }
  func.func @transform_9(%arg0: i32) -> (i32, i32) {
    %c0_i32 = arith.constant 0 : i32
    %c0_i32_0 = arith.constant 0 : i32
    return %arg0, %c0_i32 : i32, i32
  }
}

</mosaic_0001>

<bundles_post_ra>
// kernel: model_game_forward.1
= control target key start
LH: loop header
LB: loop body
LE: loop exit
PB: predicated region body
PF: predicated region fallthrough
CT: control target
= control target key end

     0   :  { %vm51_vm0 = vcmask 1043456   ;;  %vm52_vm1 = vcmask 1044480   ;;  %v375_v4 = vmov 65535   ;;  %s495_s0 = inlined_call_operand.vmem [shape: f32[8,9], index: 0, kind: input, shape index: {}]   ;;  %s496_s1 = inlined_call_operand.vmem [shape: bf16[9,128], index: 1, kind: input, shape index: {}]   ;;  %s497_s2 = inlined_call_operand.vmem [shape: f32[1,128], index: 2, kind: input, shape index: {}]   ;;  %s498_s3 = inlined_call_operand.vmem [shape: bf16[128,64], index: 3, kind: input, shape index: {}]   ;;  %s499_s4 = inlined_call_operand.vmem [shape: f32[1,64], index: 4, kind: input, shape index: {}]   ;;  %s500_s5 = inlined_call_operand.vmem [shape: bf16[64,32], index: 5, kind: input, shape index: {}]   ;;  %s501_s6 = inlined_call_operand.vmem [shape: f32[1,32], index: 6, kind: input, shape index: {}]   ;;  %s502_s7 = inlined_call_operand.vmem [shape: bf16[32,9], index: 7, kind: input, shape index: {}]   ;;  %s503_s8 = inlined_call_operand.vmem [shape: f32[1,9], index: 8, kind: input, shape index: {}]   ;;  %s504_s9 = inlined_call_operand.hbm [shape: f32[8,9], index: 9, kind: output, shape index: {}]  }
   0x1   :  { %v267_v0 = vld [vmem:[%s496_s1] sm:$0xf]  ;;  %v328_v1 = vld [vmem:[%s496_s1] sm:$0x10]  ;;  %v336_v3 = vld [vmem:[%s498_s3 + $0x38] sm:$0xff]  ;;  %v53_v5 = vsel %vm51_vm0, 4294967295, %v375_v4 }
   0x2   :  { %v268_v2 = vor.u32 %v328_v1, %v267_v0  ;;  %v34_v6 = vld [vmem:[%s495_s0] sm:$0xff]  ;;  %v54_v7 = vsel %vm52_vm1, %v53_v5, 0  ;;  %141 = vmatpush.bf16.msra.mxu1 %v336_v3  ;;  %v335_v8 = vld [vmem:[%s498_s3 + $0x30] sm:$0xff] }
   0x3   :  { %v35_v10 = vpack.c.bf16 %v34_v6, %v34_v6 }
   0x4   :  { %v56_v9 = vand.u32 %v268_v2, %v54_v7 }
   0x5   :  { %14 = vsyncpa [#allocation3], 0  ;;  %vm47_vm2 = vcmask 72704   ;;  %v334_v11 = vld [vmem:[%s498_s3 + $0x28] sm:$0xff]  ;;  %v333_v12 = vld [vmem:[%s498_s3 + $0x20] sm:$0xff]  ;;  %vm192_vm3 = vcmask 523264  }
   0x6   :  { %65 = vmatpush.bf16.msra.mxu0 %v56_v9  ;;  %142 = vmatpush.bf16.msra.mxu1 %v335_v8  ;;  %v332_v13 = vld [vmem:[%s498_s3 + $0x18] sm:$0xff]  ;;  %v331_v14 = vld [vmem:[%s498_s3 + $0x10] sm:$0xff]  ;;  %v330_v15 = vld [vmem:[%s498_s3 + $0x8] sm:$0xff]  ;;  %vm231_vm4 = vcmask 261120   ;;  %s376_s22 = smov [#allocation2]   ;;  %s256_s25 = sshll.u32 %s504_s9, 4  ;;  %s257_s25 = int_to_ptr.hbm [resolvable:$true] %s256_s25 }
   0x7   :  { %v329_v16 = vld [vmem:[%s498_s3] sm:$0xff]  ;;  %v340_v17 = vld [vmem:[%s500_s5 + $0x18] sm:$0xff]  ;;  %v339_v18 = vld [vmem:[%s500_s5 + $0x10] sm:$0xff]  ;;  %s254_s23 = sshll.u32 %s376_s22, 4  ;;  %s255_s23 = int_to_ptr.vmem [resolvable:$true] %s254_s23 }
   0x8   :  { %200 = vmatpush.bf16.msra.mxu2 %v340_v17  ;;  %v345_v19 = vld [vmem:[%s497_s2] ss:$0 sm:$0xff]  ;;  %v338_v25 = vld [vmem:[%s500_s5 + $0x8] sm:$0xff] }
   0x9   :  { %269 = vmatmul.msk.bf16.vlgmr.msra.gmra.mxu0 %vm47_vm2, %v35_v10  ;;  %v337_v26 = vld [vmem:[%s500_s5] sm:$0xff]  ;;  %v342_v33 = vld [vmem:[%s502_s7 + $0x8] sm:$0xff] }
   0xa   :  { %143 = vmatpush.bf16.msra.mxu1 %v334_v11  ;;  %v346_v27 = vld [vmem:[%s499_s4] ss:$0 sm:$0xff]  ;;  %241 = vmatpush.bf16.msra.mxu3 %v342_v33 }
   0xb   :  { %v341_v34 = vld [vmem:[%s502_s7] sm:$0xff] }
   0xc   :  { %201 = vmatpush.bf16.msra.mxu2 %v339_v18  ;;  %v347_v35 = vld [vmem:[%s501_s6] ss:$0 sm:$0xff] }
   0xd   :  { %v348_v41 = vld [vmem:[%s503_s8] ss:$0 sm:$0xff] }
   0xe   :  { %144 = vmatpush.bf16.msra.mxu1 %v333_v12  ;;  %242 = vmatpush.bf16.msra.mxu3 %v341_v34 }
  0x10   :  { %202 = vmatpush.bf16.msra.mxu2 %v338_v25 }
  0x12   :  { %145 = vmatpush.bf16.msra.mxu1 %v332_v13 }
  0x14   :  { %203 = vmatpush.bf16.msra.mxu2 %v337_v26 }
  0x16   :  { %146 = vmatpush.bf16.msra.mxu1 %v331_v14 }
  0x1a   :  { %147 = vmatpush.bf16.msra.mxu1 %v330_v15 }
  0x1e   :  { %148 = vmatpush.bf16.msra.mxu1 %v329_v16 }
  0x86   :  { %v67_v20 = vpop.f32.mrf.mxu0 }
  0x87   :  { %v68_v21 = vadd.f32 %v345_v19, %v67_v20 }
  0x89   :  { %v71_v22 = vmax.f32 %v68_v21, 0.0 }
  0x8b   :  { %v72_v23 = vpack.c.bf16 %v71_v22, %v71_v22 }
  0x8d   :  { %149 = vmatmul.bf16.vlgmr.msra.gmra.mxu1 %v72_v23 }
  0x8e   :  { %v69_v24 = vpop.f32.mrf.mxu0 }
 0x10a   :  { %v150_v28 = vpop.f32.mrf.mxu1 }
 0x10b   :  { %v151_v29 = vadd.f32 %v346_v27, %v150_v28 }
 0x10d   :  { %v154_v30 = vmax.f32 %v151_v29, 0.0 }
 0x10f   :  { %v155_v31 = vpack.c.bf16 %v154_v30, %v154_v30 }
 0x111   :  { %318 = vmatmul.msk.bf16.vlgmr.msra.gmra.mxu2 %vm192_vm3, %v155_v31 }
 0x112   :  { %v152_v32 = vpop.f32.mrf.mxu1 }
 0x194   :  { %v205_v36 = vpop.f32.mrf.mxu2 }
 0x195   :  { %v206_v37 = vadd.f32 %v347_v35, %v205_v36 }
 0x197   :  { %v209_v38 = vmax.f32 %v206_v37, 0.0 }
 0x199   :  { %v210_v39 = vpack.c.bf16 %v209_v38, %v209_v38 }
 0x19b   :  { %327 = vmatmul.msk.bf16.vlgmr.msra.gmra.mxu3 %vm231_vm4, %v210_v39 }
 0x19c   :  { %v207_v40 = vpop.f32.mrf.mxu2 }
 0x21e   :  { %v244_v42 = vpop.f32.mrf.mxu3 }
 0x21f   :  { %v245_v43 = vadd.f32 %v348_v41, %v244_v42 }
 0x221   :  { %248 = vst.msk [vmem:[#allocation2] sm:$0xff] %vm47_vm2, %v245_v43 }
 0x222   :  { %259 = dma.vmem_to_hbm [thread:$0]  %s255_s23, 128, %s257_s25, [#allocation3]  }
 0x226   :  { %v246_v44 = vpop.f32.mrf.mxu3 }
 0x227   :  { %373 = dma.done.wait [#allocation3], 128  }
 0x228   :  { %374 = vsyncadd [#allocation3], 4294967168 }
 0x229   :  { %264 = vsyncpa [#allocation3], 1 }

</bundles_post_ra>
